<compile_context>
chip_gen: v6e
topology: v6e:2x2x1
jax: 0.10.0
libtpu: 0.0.40
codegen_flags: <defaults>
</compile_context>

<pallas_src>
import functools

import numpy as np
import jax
import jax.numpy as jnp
from jax.experimental import pallas as pl
from jax.experimental.pallas import tpu as pltpu


_DEFAULT_TM = 512     # batch-tile rows (multiple of 8)
_DEFAULT_TN = 4096    # center-tile cols (multiple of 128 -> lane-dense output)


def _round_up(x, m):
    return ((x + m - 1) // m) * m


def _build_centers_np(domain, input_dim, output_dim):
    """Host-side construction of the RBF-center grid (domain is static).

    Returns centers with shape (input_dim, n_centers), float32.
    """
    dom = np.asarray(domain, dtype=np.float32)
    if input_dim == 2:
        m = int(round(np.sqrt(output_dim)))
        if m * m != output_dim:
            raise ValueError(
                f"output_dim must be a perfect square for input_dim == 2, got {output_dim}")
        x1 = np.linspace(dom[:, 0].min(), dom[:, 0].max(), m, dtype=np.float32)
        x2 = np.linspace(dom[:, 1].min(), dom[:, 1].max(), m, dtype=np.float32)
        X1, X2 = np.meshgrid(x1, x2, indexing="ij")           # torch.meshgrid default
        centers = np.stack([X1.ravel(), X2.ravel()], axis=0)  # (2, m*m)
    elif input_dim == 1:
        centers = np.linspace(dom.min(), dom.max(), output_dim,
                              dtype=np.float32)[None, :]      # (1, output_dim)
    else:
        raise NotImplementedError("Only implemented for n=1 and n=2 input dimensions")
    return centers.astype(np.float32)


def _rbf_embed_kernel(x_ref, c_ref, csq_ref, o_ref, *, input_dim, tn, neg_inv_two_l2):
    """One (tm, tn) output tile of exp(-||x - c||^2 / (2 l^2)).

    x_ref:   (tm, input_dim)       f32 VMEM  raw inputs
    c_ref:   (input_dim, cent_pad) f32 VMEM  grid-resident centers / l^2
    csq_ref: (1, cent_pad)         f32 VMEM  grid-resident -||c||^2 / (2 l^2)
    o_ref:   (tm, tn)              f32 VMEM
    """
    j = pl.program_id(1)
    start = pl.multiple_of(j * tn, 128)

    x = x_ref[...]                                        # (tm, d)

    # -||x||^2 / (2 l^2) on a skinny (tm, 1) column (negligible VALU work).
    xsq = x[:, 0:1] * x[:, 0:1]
    for d in range(1, input_dim):
        xsq = xsq + x[:, d:d + 1] * x[:, d:d + 1]
    xsq_scaled = xsq * neg_inv_two_l2                      # (tm, 1)

    # Cross term x . c / l^2 as an exact-f32 VPU outer-product sum (K <= 2,
    # the MXU would be >98% idle and risks an LHS relayout).
    acc = x[:, 0:1] * c_ref[0:1, pl.ds(start, tn)]         # (tm, tn)
    for d in range(1, input_dim):
        acc = acc + x[:, d:d + 1] * c_ref[d:d + 1, pl.ds(start, tn)]

    csq = csq_ref[0:1, pl.ds(start, tn)]                   # (1, tn)

    # exponent = x.c/l^2 - ||c||^2/(2l^2) - ||x||^2/(2l^2) = -||x-c||^2/(2l^2)
    o_ref[...] = jnp.exp((acc + csq) + xsq_scaled).astype(o_ref.dtype)


def embedding_layer_forward(X, domain, output_dim, rbf_ls=1.0,
                            tile_m=_DEFAULT_TM, tile_n=_DEFAULT_TN,
                            out_dtype=jnp.float32):
    """JAX/Pallas equivalent of EmbeddingLayer.forward.

    X:       (batch, input_dim) float array
    domain:  (n_test, input_dim) static (host) float array (only extents used)
    returns: (batch, output_dim) out_dtype array (float32 by default, matching
             the PyTorch module; pass jnp.bfloat16 to halve HBM writeback)
    """
    X = jnp.asarray(X, jnp.float32)
    batch, input_dim = X.shape

    inv_l2 = 1.0 / float(rbf_ls) ** 2
    neg_inv_two_l2 = -0.5 * inv_l2

    # Static host precompute: scaled center grid and scaled -||c||^2.
    centers = _build_centers_np(domain, input_dim, output_dim)     # (d, M)
    n_centers = centers.shape[1]
    c_sq_scaled = neg_inv_two_l2 * np.sum(centers * centers, axis=0,
                                          keepdims=True)            # (1, M)
    centers_scaled = centers * inv_l2                                # (d, M)

    # --- tile sizes & padding (lane-dense output, 8-aligned sublanes) -------
    batch_al = _round_up(batch, 8)
    tm = min(tile_m, batch_al)
    batch_pad = _round_up(batch, tm)

    cent_al = _round_up(n_centers, 128)
    tn = min(tile_n, cent_al)
    cent_pad = _round_up(n_centers, tn)

    if cent_pad != n_centers:
        pad = cent_pad - n_centers
        centers_scaled = np.pad(centers_scaled, ((0, 0), (0, pad)))
        c_sq_scaled = np.pad(c_sq_scaled, ((0, 0), (0, pad)))
    centers_j = jnp.asarray(centers_scaled, jnp.float32)
    c_sq_j = jnp.asarray(c_sq_scaled, jnp.float32)

    if batch_pad != batch:
        X = jnp.pad(X, ((0, batch_pad - batch), (0, 0)))

    grid = (batch_pad // tm, cent_pad // tn)

    kernel = functools.partial(
        _rbf_embed_kernel,
        input_dim=input_dim,
        tn=tn,
        neg_inv_two_l2=neg_inv_two_l2,
    )

    # Advisory cost hint: ~2*d mul/add + 2 adds per element, 1 exp per element,
    # traffic dominated by the output write.
    n_out = batch_pad * cent_pad
    cost = pl.CostEstimate(
        flops=(2 * input_dim + 3) * n_out,
        transcendentals=n_out,
        bytes_accessed=(n_out * jnp.dtype(out_dtype).itemsize
                        + batch_pad * input_dim * 4
                        + (input_dim + 1) * cent_pad * 4),
    )

    out = pl.pallas_call(
        kernel,
        out_shape=jax.ShapeDtypeStruct((batch_pad, cent_pad), out_dtype),
        grid=grid,
        in_specs=[
            # X tile: changes only with i -> re-DMA'd only on batch-tile change.
            pl.BlockSpec((tm, input_dim), lambda i, j: (i, 0)),
            # Centers / csq: full-extent, constant block index -> loaded once,
            # sliced in-kernel with pl.ds (no per-step tiny DMAs).
            pl.BlockSpec((input_dim, cent_pad), lambda i, j: (0, 0)),
            pl.BlockSpec((1, cent_pad), lambda i, j: (0, 0)),
        ],
        out_specs=pl.BlockSpec((tm, tn), lambda i, j: (i, j)),
        compiler_params=pltpu.CompilerParams(
            dimension_semantics=("parallel", "parallel")),           # megacore
        cost_estimate=cost,
    )(X, centers_j, c_sq_j)

    return out[:batch, :n_centers]


def _reference_forward(X, domain, output_dim, rbf_ls=1.0):
    """Pure-JAX reference mirroring the PyTorch loop (for verification)."""
    X = jnp.asarray(X, jnp.float32)
    domain = jnp.asarray(domain, jnp.float32)
    input_dim = X.shape[1]
    if input_dim == 2:
        m = int(round(np.sqrt(output_dim)))
        x1 = jnp.linspace(domain[:, 0].min(), domain[:, 0].max(), m)
        x2 = jnp.linspace(domain[:, 1].min(), domain[:, 1].max(), m)
        X1, X2 = jnp.meshgrid(x1, x2, indexing="ij")
        test_subset = jnp.stack([X1.ravel(), X2.ravel()], axis=1)   # (M, 2)
    else:
        test_subset = jnp.linspace(domain.min(), domain.max(), output_dim)[:, None]
    diff = X[:, None, :] - test_subset[None, :, :]                  # (B, M, d)
    sq = jnp.sum(diff * diff, axis=-1)
    return jnp.exp(-sq / (2.0 * rbf_ls ** 2))


if __name__ == "__main__":
    key = jax.random.PRNGKey(0)
    k1, k2, k3 = jax.random.split(key, 3)

    # Domain: regular 16x16 grid over [-1, 1]^2 (rows are test inputs).
    g = jnp.linspace(-1.0, 1.0, 16)
    G1, G2 = jnp.meshgrid(g, g, indexing="ij")
    domain2 = jnp.stack([G1.ravel(), G2.ravel()], axis=1)            # (256, 2)

    # Case 1: input_dim = 2, output_dim = 16 (4x4 RBF grid), rbf_ls = 1.
    batch, input_dim, output_dim, rbf_ls = 8, 2, 16, 1.0
    Xa = jax.random.uniform(k1, (batch, input_dim), jnp.float32, minval=-1.0, maxval=1.0)
    out_a = jax.block_until_ready(embedding_layer_forward(Xa, domain2, output_dim, rbf_ls))
    ref_a = _reference_forward(Xa, domain2, output_dim, rbf_ls)
    assert out_a.shape == (batch, output_dim)
    np.testing.assert_allclose(np.asarray(out_a), np.asarray(ref_a), rtol=1e-5, atol=1e-5)

    # Case 2: non-aligned batch + larger perfect-square output, non-unit rbf_ls
    # (exercises padding, multi-tile grid, and the folded scaling).
    batch_b, output_dim_b, rbf_ls_b = 37, 400, 0.5
    Xb = jax.random.uniform(k2, (batch_b, 2), jnp.float32, minval=-1.0, maxval=1.0)
    out_b = jax.block_until_ready(
        embedding_layer_forward(Xb, domain2, output_dim_b, rbf_ls_b, tile_n=128))
    ref_b = _reference_forward(Xb, domain2, output_dim_b, rbf_ls_b)
    assert out_b.shape == (batch_b, output_dim_b)
    np.testing.assert_allclose(np.asarray(out_b), np.asarray(ref_b), rtol=1e-5, atol=1e-5)

    # Case 3: input_dim = 1.
    batch_c, output_dim_c = 8, 32
    domain1 = jnp.linspace(-2.0, 2.0, 64)[:, None]                   # (64, 1)
    Xc = jax.random.uniform(k3, (batch_c, 1), jnp.float32, minval=-2.0, maxval=2.0)
    out_c = jax.block_until_ready(embedding_layer_forward(Xc, domain1, output_dim_c, rbf_ls))
    ref_c = _reference_forward(Xc, domain1, output_dim_c, rbf_ls)
    assert out_c.shape == (batch_c, output_dim_c)
    np.testing.assert_allclose(np.asarray(out_c), np.asarray(ref_c), rtol=1e-5, atol=1e-5)

    print("KERNEL_OK")
</pallas_src>

<mosaic_0001>
module attributes {stable_mosaic.version = 11 : i64} {
  func.func @_rbf_embed_kernel(%arg0: i32, %arg1: i32, %arg2: memref<8x2xf32, #tpu.memory_space<vmem>>, %arg3: memref<2x128xf32, #tpu.memory_space<vmem>>, %arg4: memref<1x128xf32, #tpu.memory_space<vmem>>, %arg5: memref<8x128xf32, #tpu.memory_space<vmem>>) attributes {dimension_semantics = [#tpu.dimension_semantics<parallel>, #tpu.dimension_semantics<parallel>], iteration_bounds = array<i64: 1, 1>, scalar_prefetch = 0 : i64, scratch_operands = 0 : i64, tpu.core_type = #tpu.core_type<tc>, window_params = [{transform_indices = @transform_0, window_bounds = array<i64: 8, 2>}, {pipeline_mode = #tpu.pipeline_mode<synchronous>, transform_indices = @transform_1, window_bounds = array<i64: 2, 128>}, {pipeline_mode = #tpu.pipeline_mode<synchronous>, transform_indices = @transform_2, window_bounds = array<i64: 1, 128>}, {transform_indices = @transform_3, window_bounds = array<i64: 8, 128>}]} {
    %c128_i32 = arith.constant 128 : i32
    %0 = arith.muli %arg1, %c128_i32 : i32
    %1 = tpu.assume_multiple %0, 128 : i32
    %c0 = arith.constant 0 : index
    %c0_0 = arith.constant 0 : index
    %2 = vector.load %arg2[%c0, %c0_0] : memref<8x2xf32, #tpu.memory_space<vmem>>, vector<8x2xf32>
    %3 = vector.extract_strided_slice %2 {offsets = [0, 0], sizes = [8, 1], strides = [1, 1]} : vector<8x2xf32> to vector<8x1xf32>
    %4 = vector.extract_strided_slice %2 {offsets = [0, 0], sizes = [8, 1], strides = [1, 1]} : vector<8x2xf32> to vector<8x1xf32>
    %5 = arith.mulf %3, %4 : vector<8x1xf32>
    %6 = vector.extract_strided_slice %2 {offsets = [0, 1], sizes = [8, 1], strides = [1, 1]} : vector<8x2xf32> to vector<8x1xf32>
    %7 = vector.extract_strided_slice %2 {offsets = [0, 1], sizes = [8, 1], strides = [1, 1]} : vector<8x2xf32> to vector<8x1xf32>
    %8 = arith.mulf %6, %7 : vector<8x1xf32>
    %9 = arith.addf %5, %8 : vector<8x1xf32>
    %cst = arith.constant -5.000000e-01 : f32
    %10 = vector.broadcast %cst : f32 to vector<8x1xf32>
    %11 = arith.mulf %9, %10 : vector<8x1xf32>
    %12 = vector.extract_strided_slice %2 {offsets = [0, 0], sizes = [8, 1], strides = [1, 1]} : vector<8x2xf32> to vector<8x1xf32>
    %c0_1 = arith.constant 0 : index
    %13 = arith.index_cast %1 : i32 to index
    %14 = vector.load %arg3[%c0_1, %13] : memref<2x128xf32, #tpu.memory_space<vmem>>, vector<1x128xf32>
    %15 = vector.broadcast %12 : vector<8x1xf32> to vector<8x128xf32>
    %16 = vector.broadcast %14 : vector<1x128xf32> to vector<8x128xf32>
    %17 = arith.mulf %15, %16 : vector<8x128xf32>
    %18 = vector.extract_strided_slice %2 {offsets = [0, 1], sizes = [8, 1], strides = [1, 1]} : vector<8x2xf32> to vector<8x1xf32>
    %c1 = arith.constant 1 : index
    %19 = arith.index_cast %1 : i32 to index
    %20 = vector.load %arg3[%c1, %19] : memref<2x128xf32, #tpu.memory_space<vmem>>, vector<1x128xf32>
    %21 = vector.broadcast %18 : vector<8x1xf32> to vector<8x128xf32>
    %22 = vector.broadcast %20 : vector<1x128xf32> to vector<8x128xf32>
    %23 = arith.mulf %21, %22 : vector<8x128xf32>
    %24 = arith.addf %17, %23 : vector<8x128xf32>
    %c0_2 = arith.constant 0 : index
    %25 = arith.index_cast %1 : i32 to index
    %26 = vector.load %arg4[%c0_2, %25] : memref<1x128xf32, #tpu.memory_space<vmem>>, vector<1x128xf32>
    %27 = vector.broadcast %26 : vector<1x128xf32> to vector<8x128xf32>
    %28 = arith.addf %24, %27 : vector<8x128xf32>
    %29 = vector.broadcast %11 : vector<8x1xf32> to vector<8x128xf32>
    %30 = arith.addf %28, %29 : vector<8x128xf32>
    %31 = math.exp %30 : vector<8x128xf32>
    %c0_3 = arith.constant 0 : index
    %c0_4 = arith.constant 0 : index
    %32 = vector.load %arg5[%c0_3, %c0_4] : memref<8x128xf32, #tpu.memory_space<vmem>>, vector<8x128xf32>
    tpu.vector_store %arg5[%c0_3, %c0_4], %31 {strides = array<i32>} : memref<8x128xf32, #tpu.memory_space<vmem>>, vector<8x128xf32>,
    return
  }
  func.func @transform_0(%arg0: i32, %arg1: i32) -> (i32, i32) {
    %c0_i32 = arith.constant 0 : i32
    %c0_i32_0 = arith.constant 0 : i32
    return %arg0, %c0_i32 : i32, i32
  }
  func.func @transform_1(%arg0: i32, %arg1: i32) -> (i32, i32) {
    %c0_i32 = arith.constant 0 : i32
    %c0_i32_0 = arith.constant 0 : i32
    %c0_i32_1 = arith.constant 0 : i32
    return %c0_i32, %c0_i32_0 : i32, i32
  }
  func.func @transform_2(%arg0: i32, %arg1: i32) -> (i32, i32) {
    %c0_i32 = arith.constant 0 : i32
    %c0_i32_0 = arith.constant 0 : i32
    %c0_i32_1 = arith.constant 0 : i32
    return %c0_i32, %c0_i32_0 : i32, i32
  }
  func.func @transform_3(%arg0: i32, %arg1: i32) -> (i32, i32) {
    %c0_i32 = arith.constant 0 : i32
    return %arg0, %arg1 : i32, i32
  }
}

</mosaic_0001>

<bundles_post_ra>
// kernel: tpu_custom_call.1
= control target key start
LH: loop header
LB: loop body
LE: loop exit
PB: predicated region body
PF: predicated region fallthrough
CT: control target
= control target key end

     0   :  { %v117_v2 = vmov 1   ;;  %v118_v3 = vmov 0   ;;  %s156_s0 = inlined_call_operand.vmem [shape: f32[8,2], index: 0, kind: input, shape index: {}]   ;;  %s157_s1 = inlined_call_operand.vmem [shape: f32[2,128], index: 1, kind: input, shape index: {}]   ;;  %s158_s2 = inlined_call_operand.vmem [shape: f32[1,128], index: 2, kind: input, shape index: {}]   ;;  %s159_s3 = inlined_call_operand.hbm [shape: f32[8,128], index: 3, kind: output, shape index: {}]  }
   0x1   :  { %v16_v0 = vld [vmem:[%s156_s0] sm:$0xff]  ;;  %91 = vset.pattern.permute.xlu1 %v117_v2  ;;  %90 = vset.pattern.permute.xlu0 %v118_v3 }
   0x2   :  { %v17_v1 = vmul.f32 %v16_v0, %v16_v0 }
   0x3   :  { %8 = vsyncpa [#allocation3], 0  ;;  %40 = vperm.xlu1 %91, %v16_v0   ;;  %s119_s14 = smov 127   ;;  %v84_v7 = vld [vmem:[%s157_s1 + $0x1] ss:$0 sm:$0xff]  ;;  %s120_s20 = smov [#allocation2]  }
   0x4   :  { %19 = vrot.lane.b32.xlu0 %v17_v1, %s119_s14  ;;  %v83_v9 = vld [vmem:[%s157_s1] ss:$0 sm:$0xff]  ;;  %s73_s21 = sshll.u32 %s120_s20, 4  ;;  %s74_s21 = int_to_ptr.vmem [resolvable:$true] %s73_s21 }
   0x5   :  { %v85_v14 = vld [vmem:[%s158_s2] ss:$0 sm:$0xff]  ;;  %s95_s22 = scalar_lea.vmem %s74_s21, 128  ;;  %p100_p1 = scmp.lt.s32.totalorder %s74_s21, %s74_s21 }
   0x6   :  { %p96_p0 = scmp.ne.s32.totalorder %s74_s21, %s95_s22  ;;  %p101_p2 = scmp.lt.s32.totalorder %s95_s22, %s95_s22 }
   0x7   :  { %92 = vset.pattern.permute.xlu1 %v118_v3 }
   0x8   :  { %30 = vperm.xlu0 %90, %v16_v0   ;;  %p102_p3 = por %p101_p2, %p100_p1 }
   0xa   :  { %p103_p4 = pnand %p102_p3, %p96_p0 }
  0x76   :  { %v20_v4 = vpop.permute.xlu0 %19 }
  0x77   :  { %v22_v5 = vadd.f32 %v20_v4, %v17_v1 }
  0x79   :  { %v23_v6 = vmul.f32 -0.5, %v22_v5 }
  0x7b   :  { %60 = vperm.xlu1 %92, %v23_v6  }
  0x7e   :  { %v41_v8 = vpop.permute.xlu1 %40 }
  0x7f   :  { %v47_v11 = vmul.f32 %v84_v7, %v41_v8 }
  0x83   :  { %v31_v10 = vpop.permute.xlu0 %30 }
  0x84   :  { %v37_v12 = vmul.f32 %v83_v9, %v31_v10 }
  0x86   :  { %v48_v13 = vadd.f32 %v47_v11, %v37_v12 }
  0x88   :  { %v57_v15 = vadd.f32 %v85_v14, %v48_v13 }
  0xf6   :  { %v61_v16 = vpop.permute.xlu1 %60 }
  0xf7   :  { %v63_v17 = vadd.f32 %v61_v16, %v57_v15 }
  0xf9   :  { %v64_v18 = vmul.f32 1.442695, %v63_v17 }
  0xfb   :  { %93 = vpow2.f32 %v64_v18 }
 0x108   :  { %v94_v19 = vpop.eup %93 }
 0x109   :  { %66 = vst [vmem:[#allocation2] sm:$0xff] %v94_v19 }
 0x10a   :  { %106 = shalt.err (!%p103_p4)
}
 0x10b   :  { %76 = dma.vmem_to_hbm [thread:$0]  %s74_s21, 128, %s159_s3, [#allocation3]  }
 0x10c   :  { %115 = dma.done.wait [#allocation3], 128  }
 0x10d   :  { %116 = vsyncadd [#allocation3], 4294967168 }
 0x10e   :  { %80 = vsyncpa [#allocation3], 1 }

</bundles_post_ra>
